<compile_context>
chip_gen: v7x
topology: tpu7x:2x2x1
jax: 0.10.0
libtpu: 0.0.40
codegen_flags: <defaults>
</compile_context>

<pallas_src>
import numpy as np
import jax
import jax.numpy as jnp
from jax.experimental import pallas as pl
from jax.experimental.pallas import tpu as pltpu

# ----------------------- model config (small demo shapes) --------------------
BATCH = 2
IN_SHAPE = (4, 16, 16)                       # arbitrary trailing dims; forward flattens
FEATURE_LEN = int(np.prod(IN_SHAPE))         # 1024
HIDDEN = 128
NUM_CLASSES = 5
LANE = 128
SUBLANE = 8


def _round_up(n, m):
    return (n + m - 1) // m * m


NOUT_PAD = _round_up(NUM_CLASSES, LANE)      # 128: lane-dense output block


# ----------------------------- parameter init --------------------------------
def make_params(key):
    k1, k2, k3, k4 = jax.random.split(key, 4)
    s1 = 1.0 / np.sqrt(FEATURE_LEN)
    s2 = 1.0 / np.sqrt(HIDDEN)
    return {
        "fc1_w": jax.random.uniform(k1, (HIDDEN, FEATURE_LEN), jnp.float32, -s1, s1),
        "fc1_b": jax.random.uniform(k2, (HIDDEN,), jnp.float32, -s1, s1),
        "fc2_w": jax.random.uniform(k3, (NUM_CLASSES, HIDDEN), jnp.float32, -s2, s2),
        "fc2_b": jax.random.uniform(k4, (NUM_CLASSES,), jnp.float32, -s2, s2),
    }


def pack_params(p):
    """One-time host-side repack (hoisted out of the forward path).

    Affine collapse of the two Linear layers — valid because BaseClassifierNet
    has no activation between fc1 and fc2:
        out = (x @ W1^T + b1) @ W2^T + b2 = x @ (W1^T @ W2^T) + (b1 @ W2^T + b2)
    The fold is done in float64 on the host (more accurate than the previous
    bf16 hidden intermediate); the 5 output columns are zero-padded to 128
    lanes so the kernel's store is an unmasked, lane-dense vst.
    """
    w1 = np.asarray(p["fc1_w"], np.float64)          # (HIDDEN, FEAT)
    b1 = np.asarray(p["fc1_b"], np.float64)          # (HIDDEN,)
    w2 = np.asarray(p["fc2_w"], np.float64)          # (NUM_CLASSES, HIDDEN)
    b2 = np.asarray(p["fc2_b"], np.float64)          # (NUM_CLASSES,)

    w_eff = np.zeros((FEATURE_LEN, NOUT_PAD), np.float64)
    w_eff[:, :NUM_CLASSES] = w1.T @ w2.T             # (FEAT, NUM_CLASSES)
    b_eff = np.zeros((1, NOUT_PAD), np.float64)
    b_eff[0, :NUM_CLASSES] = b1 @ w2.T + b2

    return (
        jnp.asarray(w_eff, jnp.bfloat16),            # (FEAT, 128) bf16 MXU operand
        jnp.asarray(b_eff, jnp.float32),             # (1, 128)   f32 bias
    )


# ------------------------------- Pallas kernel --------------------------------
def _fused_fc_kernel(x_ref, w_ref, b_ref, o_ref):
    # Single fused GEMM: f32 activation tile cast to bf16 in-register, bf16 MXU
    # matmul with f32 accumulation, f32 bias add, bf16 lane-dense store.
    x = x_ref[...].astype(jnp.bfloat16)
    acc = jnp.dot(x, w_ref[...], preferred_element_type=jnp.float32) + b_ref[...]
    o_ref[...] = acc.astype(o_ref.dtype)


def _pick_block(batch):
    """Row-block size for the batch (grid) axis."""
    if batch <= 32:
        # Tiny batch: one full-array block (block_shape == array dims, so the
        # (8,128) divisibility rule is satisfied without padding).
        return batch
    # Large batch: keep >= 4 grid steps (v7x has 2 TensorCores sharding the
    # "parallel" axis), cap at 1024 rows (~4 MiB f32 x-tile, double-buffered
    # still well under v5e's 16 MiB default scoped VMEM), 8-row aligned.
    return max(SUBLANE, min(1024, _round_up(pl.cdiv(batch, 4), SUBLANE)))


def base_classifier_forward(x, packed):
    w_eff, b_eff = packed
    B = x.shape[0]
    x2d = x.reshape(B, -1)                           # view/bitcast, no HBM pass
    assert x2d.shape[1] == FEATURE_LEN

    blk = _pick_block(B)
    grid = (pl.cdiv(B, blk),)                        # ragged last block masked by Pallas

    out = pl.pallas_call(
        _fused_fc_kernel,
        out_shape=jax.ShapeDtypeStruct((B, NOUT_PAD), jnp.bfloat16),
        grid=grid,
        in_specs=[
            pl.BlockSpec((blk, FEATURE_LEN), lambda i: (i, 0)),       # activations (f32, tiled rows)
            pl.BlockSpec((FEATURE_LEN, NOUT_PAD), lambda i: (0, 0)),  # fused weight (resident, bf16)
            pl.BlockSpec((1, NOUT_PAD), lambda i: (0, 0)),            # fused bias (resident, f32)
        ],
        out_specs=pl.BlockSpec((blk, NOUT_PAD), lambda i: (i, 0)),
        compiler_params=pltpu.CompilerParams(dimension_semantics=("parallel",)),
    )(x2d, w_eff, b_eff)

    # Drop the zero lane-padding; tiny (B, 5) cast back to f32 logits.
    return out[:, :NUM_CLASSES].astype(jnp.float32)


# ------------------------- pure numpy reference (f64) -------------------------
def reference_forward(x, p):
    x2d = np.asarray(x, np.float64).reshape(x.shape[0], -1)
    h = x2d @ np.asarray(p["fc1_w"], np.float64).T + np.asarray(p["fc1_b"], np.float64)
    return h @ np.asarray(p["fc2_w"], np.float64).T + np.asarray(p["fc2_b"], np.float64)


# ------------------------------------ main -------------------------------------
if __name__ == "__main__":
    key = jax.random.PRNGKey(0)
    kx, kp = jax.random.split(key)
    params = make_params(kp)
    x = jax.random.normal(kx, (BATCH,) + IN_SHAPE, jnp.float32)

    packed = pack_params(params)                     # one-time host-side fold/repack
    fwd = jax.jit(lambda xx: base_classifier_forward(xx, packed))

    out = fwd(x)
    out = jax.block_until_ready(out)

    ref = reference_forward(np.asarray(x), params)
    assert out.shape == (BATCH, NUM_CLASSES)
    np.testing.assert_allclose(np.asarray(out), ref, rtol=5e-2, atol=5e-2)

    print("KERNEL_OK")
</pallas_src>

<mosaic_0001>
module attributes {stable_mosaic.version = 11 : i64} {
  func.func @_fused_fc_kernel(%arg0: i32, %arg1: memref<2x1024xf32, #tpu.memory_space<vmem>>, %arg2: memref<1024x128xbf16, #tpu.memory_space<vmem>>, %arg3: memref<1x128xf32, #tpu.memory_space<vmem>>, %arg4: memref<2x128xbf16, #tpu.memory_space<vmem>>) attributes {dimension_semantics = [#tpu.dimension_semantics<parallel>], iteration_bounds = array<i64: 1>, scalar_prefetch = 0 : i64, scratch_operands = 0 : i64, tpu.core_type = #tpu.core_type<tc>, window_params = [{transform_indices = @transform_0, window_bounds = array<i64: 2, 1024>}, {pipeline_mode = #tpu.pipeline_mode<synchronous>, transform_indices = @transform_1, window_bounds = array<i64: 1024, 128>}, {pipeline_mode = #tpu.pipeline_mode<synchronous>, transform_indices = @transform_2, window_bounds = array<i64: 1, 128>}, {transform_indices = @transform_3, window_bounds = array<i64: 2, 128>}]} {
    %c0 = arith.constant 0 : index
    %c0_0 = arith.constant 0 : index
    %0 = vector.load %arg1[%c0, %c0_0] : memref<2x1024xf32, #tpu.memory_space<vmem>>, vector<2x1024xf32>
    %1 = arith.truncf %0 : vector<2x1024xf32> to vector<2x1024xbf16>
    %c0_1 = arith.constant 0 : index
    %c0_2 = arith.constant 0 : index
    %2 = vector.load %arg2[%c0_1, %c0_2] : memref<1024x128xbf16, #tpu.memory_space<vmem>>, vector<1024x128xbf16>
    %cst = arith.constant dense<0.000000e+00> : vector<2x128xf32>
    %3 = tpu.matmul %1, %2, %cst {dimension_numbers = #tpu.dot_dimension_numbers<[1], [0], [0], [1], [0, 0, 1, 1], [], []>} : vector<2x1024xbf16>, vector<1024x128xbf16>, vector<2x128xf32> -> vector<2x128xf32>
    %c0_3 = arith.constant 0 : index
    %c0_4 = arith.constant 0 : index
    %4 = vector.load %arg3[%c0_3, %c0_4] : memref<1x128xf32, #tpu.memory_space<vmem>>, vector<1x128xf32>
    %5 = vector.broadcast %4 : vector<1x128xf32> to vector<2x128xf32>
    %6 = arith.addf %3, %5 : vector<2x128xf32>
    %7 = arith.truncf %6 : vector<2x128xf32> to vector<2x128xbf16>
    %c0_5 = arith.constant 0 : index
    %c0_6 = arith.constant 0 : index
    %8 = vector.load %arg4[%c0_5, %c0_6] : memref<2x128xbf16, #tpu.memory_space<vmem>>, vector<2x128xbf16>
    tpu.vector_store %arg4[%c0_5, %c0_6], %7 {strides = array<i32>} : memref<2x128xbf16, #tpu.memory_space<vmem>>, vector<2x128xbf16>,
    return
  }
  func.func @transform_0(%arg0: i32) -> (i32, i32) {
    %c0_i32 = arith.constant 0 : i32
    %c0_i32_0 = arith.constant 0 : i32
    return %arg0, %c0_i32 : i32, i32
  }
  func.func @transform_1(%arg0: i32) -> (i32, i32) {
    %c0_i32 = arith.constant 0 : i32
    %c0_i32_0 = arith.constant 0 : i32
    %c0_i32_1 = arith.constant 0 : i32
    return %c0_i32, %c0_i32_0 : i32, i32
  }
  func.func @transform_2(%arg0: i32) -> (i32, i32) {
    %c0_i32 = arith.constant 0 : i32
    %c0_i32_0 = arith.constant 0 : i32
    %c0_i32_1 = arith.constant 0 : i32
    return %c0_i32, %c0_i32_0 : i32, i32
  }
  func.func @transform_3(%arg0: i32) -> (i32, i32) {
    %c0_i32 = arith.constant 0 : i32
    %c0_i32_0 = arith.constant 0 : i32
    return %arg0, %c0_i32 : i32, i32
  }
}

</mosaic_0001>

<bundles_post_ra>
// kernel: _lambda_.1
= control target key start
LH: loop header
LB: loop body
LE: loop exit
PB: predicated region body
PF: predicated region fallthrough
CT: control target
= control target key end

     0   :  { %8 = vsyncpa [#allocation3], 0  ;;  %s1016_s12 = smov [#allocation2]   ;;  %s1070_s0 = inlined_call_operand.vmem [shape: f32[2,1024], index: 0, kind: input, shape index: {}]   ;;  %s1071_s1 = inlined_call_operand.hbm [shape: bf16[1024,128], index: 1, kind: input, shape index: {}]   ;;  %s1072_s2 = inlined_call_operand.vmem [shape: f32[1,128], index: 2, kind: input, shape index: {}]   ;;  %s1073_s3 = inlined_call_operand.vmem [shape: bf16[2,128], index: 3, kind: output, shape index: {}]  }
   0x1   :  { %s16_s13 = sshll.u32 %s1016_s12, 4  ;;  %s992_s16 = scalar_lea.hbm %s1071_s1, 8192  ;;  %s17_s13 = int_to_ptr.vmem [resolvable:$true] %s16_s13 }
   0x2   :  { %p993_p0 = scmp.ne.s32.totalorder %s1071_s1, %s992_s16  ;;  %p996_p1 = scmp.lt.u32.totalorder %s992_s16, %s1071_s1 }
   0x4   :  { %p998_p2 = pnand %p996_p1, %p993_p0 }
   0x6   :  { %1001 = shalt.err (!%p998_p2)
}
   0x7   :  { %s1002_s21 = scalar_lea.vmem %s17_s13, 8192  ;;  %p1007_p4 = scmp.lt.s32.totalorder %s17_s13, %s17_s13 }
   0x8   :  { %p1003_p3 = scmp.ne.s32.totalorder %s17_s13, %s1002_s21  ;;  %p1008_p5 = scmp.lt.s32.totalorder %s1002_s21, %s1002_s21 }
   0xa   :  { %p1009_p6 = por %p1008_p5, %p1007_p4 }
   0xc   :  { %p1010_p7 = pnand %p1009_p6, %p1003_p3 }
   0xe   :  { %1013 = shalt.err (!%p1010_p7)
}
   0xf   :  { %s1017_s22 = smov 64   ;;  %s1018_s23 = smov 4  }
  0x10   :  { %22 = dma.hbm_to_vmem [thread:$0]  %s1071_s1, 8192, %s17_s13, [#allocation3], %s1017_s22, %s1017_s22, %s1018_s23  }
  0x11   :  { %1014 = dma.done.wait [#allocation3], 8192  }
  0x12   :  { %1015 = vsyncadd [#allocation3], 4294959104  ;;  %v926_v0 = vld [vmem:[#allocation2 + $0x40] sm:$0xff]   ;;  %v930_v4 = vld [vmem:[#allocation2 + $0x48] sm:$0xff]   ;;  %v1019_v22 = vmov 1983009808   ;;  %v37_v24 = vlaneseq }
  0x13   :  { %v927_v1 = vld [vmem:[#allocation2 + $0xc0] sm:$0xff]   ;;  %834 = vmatprep.subr.bf16.mxu0 %v926_v0  ;;  %v931_v5 = vld [vmem:[#allocation2 + $0xc8] sm:$0xff]   ;;  %v934_v8 = vld [vmem:[#allocation2 + $0x50] sm:$0xff]   ;;  %v35_v23 = vunpack.c.l.s4 %v1019_v22 }
  0x14   :  { %v928_v2 = vld [vmem:[#allocation2] sm:$0xff]   ;;  %856 = vmatprep.subr.bf16.mxu1 %v927_v1  ;;  %v932_v6 = vld [vmem:[#allocation2 + $0x8] sm:$0xff]   ;;  %v935_v9 = vld [vmem:[#allocation2 + $0xd0] sm:$0xff]   ;;  %v38_v30 = vshrl.u32 %v37_v24, 7 }
  0x15   :  { %v929_v3 = vld [vmem:[#allocation2 + $0x80] sm:$0xff]   ;;  %835 = vmatpush3.bf16.msra.mxu0 %v928_v2  ;;  %v933_v7 = vld [vmem:[#allocation2 + $0x88] sm:$0xff]   ;;  %v936_v10 = vld [vmem:[#allocation2 + $0x10] sm:$0xff]   ;;  %v36_v29 = vunpack.c.0.s8 %v35_v23 }
  0x16   :  { %857 = vmatpush3.bf16.msra.mxu1 %v929_v3  ;;  %836 = vmatprep.subr.bf16.mxu0 %v930_v4  ;;  %v937_v11 = vld [vmem:[#allocation2 + $0x90] sm:$0xff]   ;;  %v938_v12 = vld [vmem:[#allocation2 + $0x58] sm:$0xff]   ;;  %v942_v16 = vld [vmem:[#allocation2 + $0x60] sm:$0xff]  }
  0x17   :  { %858 = vmatprep.subr.bf16.mxu1 %v931_v5  ;;  %v939_v13 = vld [vmem:[#allocation2 + $0xd8] sm:$0xff]   ;;  %v943_v17 = vld [vmem:[#allocation2 + $0xe0] sm:$0xff]   ;;  %v946_v20 = vld [vmem:[#allocation2 + $0x68] sm:$0xff]   ;;  %v1052_v35 = vsub.s32 %v36_v29, %v38_v30 }
  0x18   :  { %v940_v14 = vld [vmem:[#allocation2 + $0x18] sm:$0xff]   ;;  %v944_v18 = vld [vmem:[#allocation2 + $0x20] sm:$0xff]   ;;  %v947_v21 = vld [vmem:[#allocation2 + $0xe8] sm:$0xff]  }
  0x19   :  { %837 = vmatpush3.bf16.msra.mxu0 %v932_v6  ;;  %v941_v15 = vld [vmem:[#allocation2 + $0x98] sm:$0xff]   ;;  %v945_v19 = vld [vmem:[#allocation2 + $0xa0] sm:$0xff]   ;;  %v948_v25 = vld [vmem:[#allocation2 + $0x28] sm:$0xff]  }
  0x1a   :  { %859 = vmatpush3.bf16.msra.mxu1 %v933_v7  ;;  %838 = vmatprep.subr.bf16.mxu0 %v934_v8  ;;  %v949_v26 = vld [vmem:[#allocation2 + $0xa8] sm:$0xff]   ;;  %v950_v27 = vld [vmem:[#allocation2 + $0x70] sm:$0xff]   ;;  %v954_v33 = vld [vmem:[#allocation2 + $0x78] sm:$0xff]  }
  0x1b   :  { %860 = vmatprep.subr.bf16.mxu1 %v935_v9  ;;  %v951_v28 = vld [vmem:[#allocation2 + $0xf0] sm:$0xff]   ;;  %v955_v34 = vld [vmem:[#allocation2 + $0xf8] sm:$0xff]   ;;  %v29_v38 = vld [vmem:[%s1070_s0] sm:$0xff] }
  0x1c   :  { %v952_v31 = vld [vmem:[#allocation2 + $0x30] sm:$0xff]   ;;  %v956_v36 = vld [vmem:[#allocation2 + $0x38] sm:$0xff]   ;;  %v40_v39 = vrot.slane %v29_v38, %v1052_v35  ;;  %v33_v40 = vcombine.high %v29_v38, %v29_v38  ;;  %v959_v41 = vld [vmem:[#allocation2 + $0x140] sm:$0xff]  }
  0x1d   :  { %839 = vmatpush3.bf16.msra.mxu0 %v936_v10  ;;  %v953_v32 = vld [vmem:[#allocation2 + $0xb0] sm:$0xff]   ;;  %v957_v37 = vld [vmem:[#allocation2 + $0xb8] sm:$0xff]   ;;  %v960_v42 = vld [vmem:[#allocation2 + $0x1c0] sm:$0xff]  }
  0x1e   :  { %861 = vmatpush3.bf16.msra.mxu1 %v937_v11  ;;  %840 = vmatprep.subr.bf16.mxu0 %v938_v12  ;;  %v48_v43 = vcombine.high %v40_v39, %v40_v39  ;;  %v47_v44 = vrot.slane %v33_v40, %v1052_v35  ;;  %v75_v45 = vpack.c.bf16 %v40_v39, %v40_v39  ;;  %v961_v48 = vld [vmem:[#allocation2 + $0x100] sm:$0xff]   ;;  %v963_v50 = vld [vmem:[#allocation2 + $0x148] sm:$0xff]   ;;  %v967_v55 = vld [vmem:[#allocation2 + $0x150] sm:$0xff]  }
  0x1f   :  { %862 = vmatprep.subr.bf16.mxu1 %v939_v13  ;;  %v962_v52 = vld [vmem:[#allocation2 + $0x180] sm:$0xff]   ;;  %v964_v53 = vld [vmem:[#allocation2 + $0x1c8] sm:$0xff]   ;;  %v968_v57 = vld [vmem:[#allocation2 + $0x1d0] sm:$0xff]  }
  0x20   :  { %v76_v46 = vpack.c.bf16 %v48_v43, %v48_v43  ;;  %v49_v47 = vcombine.high %v47_v44, %v47_v44  ;;  %v77_v49 = vpack.c.bf16 %v47_v44, %v47_v44  ;;  %v965_v54 = vld [vmem:[#allocation2 + $0x108] sm:$0xff]   ;;  %v969_v58 = vld [vmem:[#allocation2 + $0x110] sm:$0xff]   ;;  %v971_v59 = vld [vmem:[#allocation2 + $0x158] sm:$0xff]  }
  0x21   :  { %841 = vmatpush3.bf16.msra.mxu0 %v940_v14  ;;  %v966_v56 = vld [vmem:[#allocation2 + $0x188] sm:$0xff]   ;;  %v970_v60 = vld [vmem:[#allocation2 + $0x190] sm:$0xff]   ;;  %v972_v61 = vld [vmem:[#allocation2 + $0x1d8] sm:$0xff]  }
  0x22   :  { %863 = vmatpush3.bf16.msra.mxu1 %v941_v15  ;;  %842 = vmatprep.subr.bf16.mxu0 %v942_v16  ;;  %v78_v51 = vpack.c.bf16 %v49_v47, %v49_v47  ;;  %v973_v62 = vld [vmem:[#allocation2 + $0x118] sm:$0xff]   ;;  %v975_v63 = vld [vmem:[#allocation2 + $0x160] sm:$0xff]   ;;  %v979_v3 = vld [vmem:[#allocation2 + $0x168] sm:$0xff]  }
  0x23   :  { %864 = vmatprep.subr.bf16.mxu1 %v943_v17  ;;  %634 = vmatprep.mubr.bf16.mxu0 %v76_v46  ;;  %v974_v0 = vld [vmem:[#allocation2 + $0x198] sm:$0xff]   ;;  %v976_v1 = vld [vmem:[#allocation2 + $0x1e0] sm:$0xff]   ;;  %v980_v5 = vld [vmem:[#allocation2 + $0x1e8] sm:$0xff]  }
  0x24   :  { %674 = vmatprep.mubr.bf16.mxu1 %v78_v51  ;;  %v977_v2 = vld [vmem:[#allocation2 + $0x120] sm:$0xff]   ;;  %v981_v6 = vld [vmem:[#allocation2 + $0x128] sm:$0xff]   ;;  %v983_v7 = vld [vmem:[#allocation2 + $0x170] sm:$0xff]  }
  0x25   :  { %843 = vmatpush3.bf16.msra.mxu0 %v944_v18  ;;  %v978_v4 = vld [vmem:[#allocation2 + $0x1a0] sm:$0xff]   ;;  %v982_v8 = vld [vmem:[#allocation2 + $0x1a8] sm:$0xff]   ;;  %v984_v9 = vld [vmem:[#allocation2 + $0x1f0] sm:$0xff]  }
  0x26   :  { %865 = vmatpush3.bf16.msra.mxu1 %v945_v19  ;;  %844 = vmatprep.subr.bf16.mxu0 %v946_v20  ;;  %v985_v10 = vld [vmem:[#allocation2 + $0x130] sm:$0xff]   ;;  %v987_v11 = vld [vmem:[#allocation2 + $0x178] sm:$0xff]   ;;  %v30_v14 = vld [vmem:[%s1070_s0 + $0x8] sm:$0xff] }
  0x27   :  { %866 = vmatprep.subr.bf16.mxu1 %v947_v21  ;;  %v986_v12 = vld [vmem:[#allocation2 + $0x1b0] sm:$0xff]   ;;  %v988_v13 = vld [vmem:[#allocation2 + $0x1f8] sm:$0xff]   ;;  %v57_v16 = vrot.slane %v30_v14, %v1052_v35  ;;  %v50_v17 = vcombine.high %v30_v14, %v30_v14 }
  0x28   :  { %v989_v15 = vld [vmem:[#allocation2 + $0x138] sm:$0xff]  }
  0x29   :  { %845 = vmatpush3.bf16.msra.mxu0 %v948_v25  ;;  %v990_v18 = vld [vmem:[#allocation2 + $0x1b8] sm:$0xff]   ;;  %v65_v19 = vcombine.high %v57_v16, %v57_v16  ;;  %v64_v20 = vrot.slane %v50_v17, %v1052_v35  ;;  %v79_v21 = vpack.c.bf16 %v57_v16, %v57_v16 }
  0x2a   :  { %867 = vmatpush3.bf16.msra.mxu1 %v949_v26  ;;  %846 = vmatprep.subr.bf16.mxu0 %v950_v27  ;;  %v769_v27 = vld [vmem:[%s1072_s2] ss:$0 sm:$0xff] }
  0x2b   :  { %868 = vmatprep.subr.bf16.mxu1 %v951_v28  ;;  %v80_v22 = vpack.c.bf16 %v65_v19, %v65_v19  ;;  %v66_v23 = vcombine.high %v64_v20, %v64_v20  ;;  %v81_v24 = vpack.c.bf16 %v64_v20, %v64_v20 }
  0x2d   :  { %847 = vmatpush3.bf16.msra.mxu0 %v952_v31  ;;  %v82_v25 = vpack.c.bf16 %v66_v23, %v66_v23 }
  0x2e   :  { %869 = vmatpush3.bf16.msra.mxu1 %v953_v32  ;;  %848 = vmatprep.subr.bf16.mxu0 %v954_v33 }
  0x2f   :  { %870 = vmatprep.subr.bf16.mxu1 %v955_v34 }
  0x31   :  { %849 = vmatpush3.bf16.msra.mxu0 %v956_v36 }
  0x32   :  { %871 = vmatpush3.bf16.msra.mxu1 %v957_v37  ;;  %878 = vmatprep.subr.bf16.mxu0 %v959_v41 }
  0x33   :  { %900 = vmatprep.subr.bf16.mxu1 %v960_v42 }
  0x34   :  { %635 = vmatmul.mubr.bf16.vlgmr.msra.gmra.mrb[0].mxu0 %v75_v45 }
  0x35   :  { %879 = vmatpush3.bf16.msra.mxu0 %v961_v48  ;;  %675 = vmatmul.mubr.bf16.vlgmr.msra.gmra.mrb[0].mxu1 %v77_v49 }
  0x36   :  { %880 = vmatprep.subr.bf16.mxu0 %v963_v50  ;;  %901 = vmatpush3.bf16.msra.mxu1 %v962_v52 }
  0x37   :  { %902 = vmatprep.subr.bf16.mxu1 %v964_v53  ;;  %714 = vmatprep.mubr.bf16.mxu0 %v80_v22 }
  0x38   :  { %754 = vmatprep.mubr.bf16.mxu1 %v82_v25 }
  0x39   :  { %881 = vmatpush3.bf16.msra.mxu0 %v965_v54 }
  0x3a   :  { %882 = vmatprep.subr.bf16.mxu0 %v967_v55  ;;  %903 = vmatpush3.bf16.msra.mxu1 %v966_v56 }
  0x3b   :  { %904 = vmatprep.subr.bf16.mxu1 %v968_v57 }
  0x3d   :  { %883 = vmatpush3.bf16.msra.mxu0 %v969_v58 }
  0x3e   :  { %884 = vmatprep.subr.bf16.mxu0 %v971_v59  ;;  %905 = vmatpush3.bf16.msra.mxu1 %v970_v60 }
  0x3f   :  { %906 = vmatprep.subr.bf16.mxu1 %v972_v61 }
  0x41   :  { %885 = vmatpush3.bf16.msra.mxu0 %v973_v62 }
  0x42   :  { %886 = vmatprep.subr.bf16.mxu0 %v975_v63  ;;  %907 = vmatpush3.bf16.msra.mxu1 %v974_v0 }
  0x43   :  { %908 = vmatprep.subr.bf16.mxu1 %v976_v1 }
  0x45   :  { %887 = vmatpush3.bf16.msra.mxu0 %v977_v2 }
  0x46   :  { %888 = vmatprep.subr.bf16.mxu0 %v979_v3  ;;  %909 = vmatpush3.bf16.msra.mxu1 %v978_v4 }
  0x47   :  { %910 = vmatprep.subr.bf16.mxu1 %v980_v5 }
  0x49   :  { %889 = vmatpush3.bf16.msra.mxu0 %v981_v6 }
  0x4a   :  { %890 = vmatprep.subr.bf16.mxu0 %v983_v7  ;;  %911 = vmatpush3.bf16.msra.mxu1 %v982_v8 }
  0x4b   :  { %912 = vmatprep.subr.bf16.mxu1 %v984_v9 }
  0x4d   :  { %891 = vmatpush3.bf16.msra.mxu0 %v985_v10 }
  0x4e   :  { %892 = vmatprep.subr.bf16.mxu0 %v987_v11  ;;  %913 = vmatpush3.bf16.msra.mxu1 %v986_v12 }
  0x4f   :  { %914 = vmatprep.subr.bf16.mxu1 %v988_v13 }
  0x51   :  { %893 = vmatpush3.bf16.msra.mxu0 %v989_v15 }
  0x52   :  { %915 = vmatpush3.bf16.msra.mxu1 %v990_v18 }
  0x54   :  { %715 = vmatmul.mubr.bf16.vlgmr.msra.gmra.mrb[4].mxu0 %v79_v21 }
  0x55   :  { %755 = vmatmul.mubr.bf16.vlgmr.msra.gmra.mrb[4].mxu1 %v81_v24 }
 0x107   :  { %v850_v26 = vpop.f32.mrb[0].mxu0 }
 0x108   :  { %v851_v28 = vpop.f32.mrb[1].mxu0  ;;  %v872_v29 = vpop.f32.mrb[0].mxu1 }
 0x109   :  { %v852_v30 = vadd.f32 %v851_v28, %v850_v26  ;;  %v853_v31 = vpop.f32.mrb[2].mxu0  ;;  %v873_v32 = vpop.f32.mrb[1].mxu1 }
 0x10a   :  { %v854_v33 = vpop.f32.mrb[3].mxu0  ;;  %v874_v35 = vadd.f32 %v873_v32, %v872_v29  ;;  %v875_v36 = vpop.f32.mrb[2].mxu1 }
 0x10b   :  { %v637_v34 = vadd.f32 %v852_v30, %v769_v27  ;;  %v876_v37 = vpop.f32.mrb[3].mxu1 }
 0x10d   :  { %v677_v38 = vadd.f32 %v874_v35, %v637_v34 }
 0x127   :  { %v894_v39 = vpop.f32.mrb[4].mxu0 }
 0x128   :  { %v895_v40 = vpop.f32.mrb[5].mxu0  ;;  %v916_v41 = vpop.f32.mrb[4].mxu1 }
 0x129   :  { %v896_v42 = vadd.f32 %v895_v40, %v894_v39  ;;  %v897_v43 = vpop.f32.mrb[6].mxu0  ;;  %v917_v44 = vpop.f32.mrb[5].mxu1 }
 0x12a   :  { %v898_v45 = vpop.f32.mrb[7].mxu0  ;;  %v918_v47 = vadd.f32 %v917_v44, %v916_v41  ;;  %v919_v48 = vpop.f32.mrb[6].mxu1 }
 0x12b   :  { %v717_v46 = vadd.f32 %v896_v42, %v677_v38  ;;  %v920_v49 = vpop.f32.mrb[7].mxu1 }
 0x12d   :  { %v757_v50 = vadd.f32 %v918_v47, %v717_v46 }
 0x12f   :  { %v762_v51 = vpack.c.bf16 %v757_v50, %v757_v50 }
 0x131   :  { %763 = vst [vmem:[%s1073_s3] sm:$0x1] %v762_v51 }
 0x132   :  { %768 = vsyncpa [#allocation3], 1 }

</bundles_post_ra>
